<compile_context>
chip_gen: v6e
topology: v6e:2x2x1
jax: 0.10.0
libtpu: 0.0.40
codegen_flags: <defaults>
</compile_context>

<pallas_src>
import functools

import jax
import jax.numpy as jnp
from jax.experimental import pallas as pl
from jax.experimental.pallas import tpu as pltpu


def _round_up(x, m):
    return (x + m - 1) // m * m


def _pick_tile(total, max_tile, unit=128):
    """Largest multiple of `unit` that divides `total` and is <= max_tile."""
    best = unit
    t = unit
    limit = min(total, max_tile)
    while t <= limit:
        if total % t == 0:
            best = t
        t += unit
    return best


# ----------------------------------------------------------------------------
# Pallas kernel 1: tiled bf16 matmul, f32 accumulator.  BN scale is pre-folded
# into the weights, so the epilogue is: per-channel shift add (+ optional
# residual add) + optional ReLU.
# ----------------------------------------------------------------------------
def _mm_kernel(a_ref, b_ref, t_ref, o_ref, acc_ref, *, relu):
    @pl.when(pl.program_id(2) == 0)
    def _init():
        acc_ref[...] = jnp.zeros_like(acc_ref)

    acc_ref[...] += jnp.dot(a_ref[...], b_ref[...],
                            preferred_element_type=jnp.float32)

    @pl.when(pl.program_id(2) == pl.num_programs(2) - 1)
    def _finalize():
        out = acc_ref[...] + t_ref[...]
        if relu:
            out = jnp.maximum(out, 0.0)
        o_ref[...] = out.astype(o_ref.dtype)


def _mm_res_kernel(a_ref, b_ref, t_ref, r_ref, o_ref, acc_ref, *, relu):
    @pl.when(pl.program_id(2) == 0)
    def _init():
        acc_ref[...] = jnp.zeros_like(acc_ref)

    acc_ref[...] += jnp.dot(a_ref[...], b_ref[...],
                            preferred_element_type=jnp.float32)

    @pl.when(pl.program_id(2) == pl.num_programs(2) - 1)
    def _finalize():
        out = acc_ref[...] + t_ref[...] + r_ref[...].astype(jnp.float32)
        if relu:
            out = jnp.maximum(out, 0.0)
        o_ref[...] = out.astype(o_ref.dtype)


def matmul_affine(a, wpack, *, relu=False, residual=None,
                  out_dtype=jnp.bfloat16, tm=512, tn=512, tk=512):
    """maybe_relu(a @ B + shift [+ residual]).

    `wpack` holds the pre-padded bf16 weight matrix (with the BN / scaling
    factor already folded in) and the f32 shift (built once by `_pack`).
    `a` is cast to bf16; accumulation is f32.
    """
    M, K = a.shape
    assert K == wpack["k"], (K, wpack["k"])
    Kp, Np = wpack["b"].shape
    N = wpack["n"]

    tk_e = _pick_tile(Kp, tk)
    tn_e = _pick_tile(Np, tn)
    tm_e = min(tm, _round_up(M, 8))
    Mp = _round_up(M, tm_e)

    a_p = a.astype(jnp.bfloat16)
    if (Mp, Kp) != (M, K):
        a_p = jnp.pad(a_p, ((0, Mp - M), (0, Kp - K)))

    grid = (Mp // tm_e, Np // tn_e, Kp // tk_e)
    in_specs = [
        pl.BlockSpec((tm_e, tk_e), lambda i, j, k: (i, k)),
        pl.BlockSpec((tk_e, tn_e), lambda i, j, k: (k, j)),
        pl.BlockSpec((1, tn_e), lambda i, j, k: (0, j)),
    ]
    operands = [a_p, wpack["b"], wpack["t"]]

    bytes_accessed = ((Mp * Kp + Kp * Np) * 2 + Np * 4
                      + Mp * Np * jnp.dtype(out_dtype).itemsize)
    if residual is not None:
        r_p = residual
        if r_p.shape != (Mp, Np):
            r_p = jnp.pad(r_p, ((0, Mp - M), (0, Np - N)))
        in_specs.append(pl.BlockSpec((tm_e, tn_e), lambda i, j, k: (i, j)))
        operands.append(r_p)
        kernel = functools.partial(_mm_res_kernel, relu=relu)
        bytes_accessed += Mp * Np * 2
    else:
        kernel = functools.partial(_mm_kernel, relu=relu)

    out = pl.pallas_call(
        kernel,
        out_shape=jax.ShapeDtypeStruct((Mp, Np), out_dtype),
        grid=grid,
        in_specs=in_specs,
        out_specs=pl.BlockSpec((tm_e, tn_e), lambda i, j, k: (i, j)),
        scratch_shapes=[pltpu.VMEM((tm_e, tn_e), jnp.float32)],
        compiler_params=pltpu.CompilerParams(
            dimension_semantics=("parallel", "parallel", "arbitrary")),
        cost_estimate=pl.CostEstimate(
            flops=2 * Mp * Kp * Np,
            transcendentals=0,
            bytes_accessed=int(bytes_accessed)),
    )(*operands)
    return out[:M, :N]


# ----------------------------------------------------------------------------
# Pallas kernel 2: attention core of AttentionPool2d
#   One grid step per batch element; all heads processed together via batched
#   MXU matmuls; softmax reciprocal on the EUP.
# ----------------------------------------------------------------------------
def _attn_pool_kernel(q_ref, k_ref, v_ref, o_ref):
    q = q_ref[0]  # (H, 1, D) bf16, already scaled by head_dim**-0.5
    k = k_ref[0]  # (H, L, D) bf16
    v = v_ref[0]  # (H, L, D) bf16
    s = jnp.einsum('hqd,hkd->hqk', q, k, preferred_element_type=jnp.float32)
    s = s - jnp.max(s, axis=-1, keepdims=True)
    p = jnp.exp(s)
    denom = jnp.sum(p, axis=-1, keepdims=True)
    p = p * pl.reciprocal(denom, approx=True)
    o = jnp.einsum('hqk,hkd->hqd', p.astype(v.dtype), v,
                   preferred_element_type=jnp.float32)   # (H, 1, D)
    o_ref[0] = o[:, 0, :].astype(o_ref.dtype)


def pallas_attention(q, k, v):
    """q: (B, H, 1, D); k/v: (B, H, L, D)  ->  (B, H, D) float32."""
    B, H, Lq, D = q.shape
    L = k.shape[2]
    return pl.pallas_call(
        _attn_pool_kernel,
        out_shape=jax.ShapeDtypeStruct((B, H, D), jnp.float32),
        grid=(B,),
        in_specs=[
            pl.BlockSpec((1, H, Lq, D), lambda b: (b, 0, 0, 0)),
            pl.BlockSpec((1, H, L, D), lambda b: (b, 0, 0, 0)),
            pl.BlockSpec((1, H, L, D), lambda b: (b, 0, 0, 0)),
        ],
        out_specs=pl.BlockSpec((1, H, D), lambda b: (b, 0, 0)),
        compiler_params=pltpu.CompilerParams(dimension_semantics=("parallel",)),
    )(q, k, v)


# ----------------------------------------------------------------------------
# JAX glue: im2col conv wrapper, avg pool
# ----------------------------------------------------------------------------
def conv_bn_act(x, wp, *, stride=1, padding=0, relu=True, residual=None,
                out_dtype=jnp.bfloat16):
    """x: (B,H,W,Cin) NHWC bf16; wp: packed conv weight with folded BN."""
    B, H, W, Cin = x.shape
    kh, kw = wp["kh"], wp["kw"]
    if kh == 1 and kw == 1 and stride == 1 and padding == 0:
        Hout, Wout = H, W
        a = x.reshape(B * H * W, Cin)
    else:
        # TODO(synk): fuse im2col into the matmul reduction (grid axis over the
        # kh*kw taps) to avoid materializing the kh*kw-sized column buffer in HBM.
        if padding > 0:
            x = jnp.pad(x, ((0, 0), (padding, padding), (padding, padding), (0, 0)))
        Hp, Wp = x.shape[1], x.shape[2]
        Hout = (Hp - kh) // stride + 1
        Wout = (Wp - kw) // stride + 1
        patches = []
        for ki in range(kh):
            for kj in range(kw):
                patches.append(
                    x[:, ki:ki + stride * Hout:stride, kj:kj + stride * Wout:stride, :])
        cols = jnp.concatenate(patches, axis=-1)         # (B, Hout, Wout, kh*kw*Cin)
        a = cols.reshape(B * Hout * Wout, kh * kw * Cin)
    r = None
    if residual is not None:
        r = residual.reshape(B * Hout * Wout, residual.shape[-1])
    out = matmul_affine(a, wp, relu=relu, residual=r, out_dtype=out_dtype)
    return out.reshape(B, Hout, Wout, wp["n"])


def avg_pool(x, p):
    if p == 1:
        return x
    B, H, W, C = x.shape
    y = x.astype(jnp.float32).reshape(B, H // p, p, W // p, p, C).mean(axis=(2, 4))
    return y.astype(x.dtype)


# ----------------------------------------------------------------------------
# Parameter initialization + one-time packing.  BN scale (and the attention
# q-scaling) is folded into the bf16 weight matrix; only the shift/bias stays
# as an f32 per-channel epilogue operand.
# ----------------------------------------------------------------------------
def _bn_affine(gamma, beta, mean, var, eps=1e-5):
    scale = gamma / jnp.sqrt(var + eps)
    shift = beta - mean * scale
    return scale, shift


def init_conv(key, cout, cin, k):
    return jax.random.normal(key, (cout, cin, k, k), jnp.float32) * (1.0 / (cin * k * k) ** 0.5)


def init_bn(key, c):
    k1, k2, k3 = jax.random.split(key, 3)
    gamma = 1.0 + 0.1 * jax.random.normal(k1, (c,), jnp.float32)
    beta = 0.1 * jax.random.normal(k2, (c,), jnp.float32)
    mean = 0.1 * jax.random.normal(k3, (c,), jnp.float32)
    var = jnp.ones((c,), jnp.float32)
    return _bn_affine(gamma, beta, mean, var)


def init_linear(key, out_f, in_f):
    k1, k2 = jax.random.split(key)
    w = jax.random.normal(k1, (out_f, in_f), jnp.float32) * (1.0 / in_f ** 0.5)
    b = 0.1 * jax.random.normal(k2, (out_f,), jnp.float32)
    return w, b


def _pack(b_mat, scale, shift, kh=1, kw=1):
    K, N = b_mat.shape
    Kp = _round_up(K, 128)
    Np = _round_up(N, 128)
    b_folded = b_mat * scale.reshape(1, N)                 # fold scale into weights (f32)
    return dict(
        b=jnp.pad(b_folded.astype(jnp.bfloat16), ((0, Kp - K), (0, Np - N))),
        t=jnp.pad(shift.reshape(1, N).astype(jnp.float32), ((0, 0), (0, Np - N))),
        k=K, n=N, kh=kh, kw=kw)


def pack_conv(w, bn):
    cout, cin, kh, kw = w.shape
    b_mat = jnp.transpose(w, (2, 3, 1, 0)).reshape(kh * kw * cin, cout)
    scale, shift = bn
    return _pack(b_mat, scale, shift, kh=kh, kw=kw)


def pack_linear(w, bias, scale_mult=1.0):
    out_f, _ = w.shape
    return _pack(w.T, scale_mult * jnp.ones((out_f,), jnp.float32), bias * scale_mult)


def pack_linear_fused(ws_and_biases):
    """Fuse several (W, b) linears sharing the same input into one matmul."""
    b_mat = jnp.concatenate([w.T for w, _ in ws_and_biases], axis=1)
    bias = jnp.concatenate([b for _, b in ws_and_biases], axis=0)
    n = b_mat.shape[1]
    return _pack(b_mat, jnp.ones((n,), jnp.float32), bias)


def make_bottleneck_params(key, inplanes, planes, stride):
    keys = jax.random.split(key, 8)
    p = dict(
        conv1=pack_conv(init_conv(keys[0], planes, inplanes, 1), init_bn(keys[1], planes)),
        conv2=pack_conv(init_conv(keys[2], planes, planes, 3), init_bn(keys[3], planes)),
        conv3=pack_conv(init_conv(keys[4], planes * 4, planes, 1), init_bn(keys[5], planes * 4)),
        stride=stride,
    )
    if stride > 1 or inplanes != planes * 4:
        p["down"] = pack_conv(init_conv(keys[6], planes * 4, inplanes, 1),
                              init_bn(keys[7], planes * 4))
    return p


def init_params(key, layers, width, heads, output_dim, input_res):
    keys = iter(jax.random.split(key, 64))
    p = {}
    p["conv1"] = pack_conv(init_conv(next(keys), width // 2, 3, 3),
                           init_bn(next(keys), width // 2))
    p["conv2"] = pack_conv(init_conv(next(keys), width // 2, width // 2, 3),
                           init_bn(next(keys), width // 2))
    p["conv3"] = pack_conv(init_conv(next(keys), width, width // 2, 3),
                           init_bn(next(keys), width))

    inplanes = [width]

    def make_layer(planes, blocks, stride):
        blks = [make_bottleneck_params(next(keys), inplanes[0], planes, stride)]
        inplanes[0] = planes * 4
        for _ in range(1, blocks):
            blks.append(make_bottleneck_params(next(keys), inplanes[0], planes, 1))
        return blks

    p["layer1"] = make_layer(width, layers[0], 1)
    p["layer2"] = make_layer(width * 2, layers[1], 2)
    p["layer3"] = make_layer(width * 4, layers[2], 2)
    p["layer4"] = make_layer(width * 8, layers[3], 2)

    embed_dim = width * 32
    sd = input_res // 32
    scaling = float(embed_dim // heads) ** -0.5
    wq, bq = init_linear(next(keys), embed_dim, embed_dim)
    wk, bk = init_linear(next(keys), embed_dim, embed_dim)
    wv, bv = init_linear(next(keys), embed_dim, embed_dim)
    wc, bc = init_linear(next(keys), output_dim, embed_dim)
    p["attnpool"] = dict(
        pos_emb=jax.random.normal(next(keys), (sd * sd + 1, embed_dim), jnp.float32)
        / embed_dim ** 0.5,
        q_pack=pack_linear(wq, bq, scale_mult=scaling),     # q scaling folded into weights
        kv_pack=pack_linear_fused([(wk, bk), (wv, bv)]),    # K and V fused into one matmul
        c_pack=pack_linear(wc, bc),
    )
    return p


# ----------------------------------------------------------------------------
# Forward pass
# ----------------------------------------------------------------------------
def bottleneck_forward(x, p):
    stride = p["stride"]
    out = conv_bn_act(x, p["conv1"], relu=True)                    # 1x1
    out = conv_bn_act(out, p["conv2"], padding=1, relu=True)       # 3x3
    if stride > 1:
        out = avg_pool(out, stride)
    if "down" in p:
        idn = avg_pool(x, stride) if stride > 1 else x
        idn = conv_bn_act(idn, p["down"], relu=False)
    else:
        idn = x
    # conv3 + bn3 with the residual add + ReLU fused into the matmul epilogue.
    return conv_bn_act(out, p["conv3"], relu=True, residual=idn)


def attnpool_forward(x, p, heads):
    B, H, W, C = x.shape
    hd = C // heads
    seq = x.reshape(B, H * W, C).astype(jnp.float32)
    seq = jnp.concatenate([seq.mean(axis=1, keepdims=True), seq], axis=1)  # (B, L, C)
    seq = seq + p["pos_emb"][None, :, :]
    L = seq.shape[1]

    q_in = seq[:, 0, :]                       # class-token query (B, C)
    kv_in = seq.reshape(B * L, C)

    q = matmul_affine(q_in, p["q_pack"], out_dtype=jnp.bfloat16)   # already scaled
    kv = matmul_affine(kv_in, p["kv_pack"], out_dtype=jnp.bfloat16)  # (B*L, 2C) single pass
    k, v = kv[:, :C], kv[:, C:]

    qh = q.reshape(B, heads, 1, hd)
    kh = k.reshape(B, L, heads, hd).transpose(0, 2, 1, 3)          # (B, heads, L, hd)
    vh = v.reshape(B, L, heads, hd).transpose(0, 2, 1, 3)

    ao = pallas_attention(qh, kh, vh).reshape(B, C)                # f32
    return matmul_affine(ao, p["c_pack"], out_dtype=jnp.float32)   # (B, output_dim)


def modified_resnet_forward(x_nchw, params, heads):
    x = jnp.transpose(x_nchw, (0, 2, 3, 1)).astype(jnp.bfloat16)   # NCHW -> NHWC
    # stem
    x = conv_bn_act(x, params["conv1"], stride=2, padding=1, relu=True)
    x = conv_bn_act(x, params["conv2"], stride=1, padding=1, relu=True)
    x = conv_bn_act(x, params["conv3"], stride=1, padding=1, relu=True)
    x = avg_pool(x, 2)
    for layer in ("layer1", "layer2", "layer3", "layer4"):
        for bp in params[layer]:
            x = bottleneck_forward(x, bp)
    return attnpool_forward(x, params["attnpool"], heads)


if __name__ == "__main__":
    # Small config: layers=(1,1,1,1), width=8 -> embed_dim=256, heads=4,
    # output_dim=16, input_resolution=32 (so attnpool spatial dim = 1, L = 2).
    layers = (1, 1, 1, 1)
    width = 8
    heads = 4
    output_dim = 16
    input_res = 32

    key = jax.random.PRNGKey(0)
    pkey, xkey = jax.random.split(key)
    params = init_params(pkey, layers, width, heads, output_dim, input_res)

    x = jax.random.normal(xkey, (2, 3, input_res, input_res), jnp.float32)
    out = modified_resnet_forward(x, params, heads)
    out = jax.block_until_ready(out)
    assert out.shape == (2, output_dim), out.shape
    assert bool(jnp.all(jnp.isfinite(out)))
    print("KERNEL_OK")
</pallas_src>

<mosaic_0001>
module attributes {stable_mosaic.version = 11 : i64} {
  func.func @_mm_kernel(%arg0: i32, %arg1: i32, %arg2: i32, %arg3: memref<512x128xbf16, #tpu.memory_space<vmem>>, %arg4: memref<128x128xbf16, #tpu.memory_space<vmem>>, %arg5: memref<1x128xf32, #tpu.memory_space<vmem>>, %arg6: memref<512x128xbf16, #tpu.memory_space<vmem>>, %arg7: memref<512x128xf32, #tpu.memory_space<vmem>>) attributes {dimension_semantics = [#tpu.dimension_semantics<parallel>, #tpu.dimension_semantics<parallel>, #tpu.dimension_semantics<arbitrary>], iteration_bounds = array<i64: 1, 1, 1>, scalar_prefetch = 0 : i64, scratch_operands = 1 : i64, tpu.core_type = #tpu.core_type<tc>, window_params = [{transform_indices = @transform_0, window_bounds = array<i64: 512, 128>}, {transform_indices = @transform_1, window_bounds = array<i64: 128, 128>}, {transform_indices = @transform_2, window_bounds = array<i64: 1, 128>}, {transform_indices = @transform_3, window_bounds = array<i64: 512, 128>}]} {
    %c0_i32 = arith.constant 0 : i32
    %0 = arith.cmpi eq, %arg2, %c0_i32 : i32
    %1 = arith.extui %0 : i1 to i32
    %c0_i32_0 = arith.constant 0 : i32
    %2 = arith.cmpi ne, %1, %c0_i32_0 : i32
    scf.if %2 {
      %cst_10 = arith.constant 0.000000e+00 : f32
      %12 = vector.broadcast %cst_10 : f32 to vector<512x128xf32>
      %c0_11 = arith.constant 0 : index
      %c0_12 = arith.constant 0 : index
      %13 = vector.load %arg7[%c0_11, %c0_12] : memref<512x128xf32, #tpu.memory_space<vmem>>, vector<512x128xf32>
      tpu.vector_store %arg7[%c0_11, %c0_12], %12 {strides = array<i32>} : memref<512x128xf32, #tpu.memory_space<vmem>>, vector<512x128xf32>,
    } else {
    }
    %c0 = arith.constant 0 : index
    %c0_1 = arith.constant 0 : index
    %3 = vector.load %arg7[%c0, %c0_1] : memref<512x128xf32, #tpu.memory_space<vmem>>, vector<512x128xf32>
    %c0_2 = arith.constant 0 : index
    %c0_3 = arith.constant 0 : index
    %4 = vector.load %arg3[%c0_2, %c0_3] : memref<512x128xbf16, #tpu.memory_space<vmem>>, vector<512x128xbf16>
    %c0_4 = arith.constant 0 : index
    %c0_5 = arith.constant 0 : index
    %5 = vector.load %arg4[%c0_4, %c0_5] : memref<128x128xbf16, #tpu.memory_space<vmem>>, vector<128x128xbf16>
    %cst = arith.constant dense<0.000000e+00> : vector<512x128xf32>
    %6 = tpu.matmul %4, %5, %cst {dimension_numbers = #tpu.dot_dimension_numbers<[1], [0], [0], [1], [0, 0, 1, 1], [], []>} : vector<512x128xbf16>, vector<128x128xbf16>, vector<512x128xf32> -> vector<512x128xf32>
    %7 = arith.addf %3, %6 : vector<512x128xf32>
    %c0_6 = arith.constant 0 : index
    %c0_7 = arith.constant 0 : index
    %8 = vector.load %arg7[%c0_6, %c0_7] : memref<512x128xf32, #tpu.memory_space<vmem>>, vector<512x128xf32>
    tpu.vector_store %arg7[%c0_6, %c0_7], %7 {strides = array<i32>} : memref<512x128xf32, #tpu.memory_space<vmem>>, vector<512x128xf32>,
    %c0_i32_8 = arith.constant 0 : i32
    %9 = arith.cmpi eq, %arg2, %c0_i32_8 : i32
    %10 = arith.extui %9 : i1 to i32
    %c0_i32_9 = arith.constant 0 : i32
    %11 = arith.cmpi ne, %10, %c0_i32_9 : i32
    scf.if %11 {
      %c0_10 = arith.constant 0 : index
      %c0_11 = arith.constant 0 : index
      %12 = vector.load %arg7[%c0_10, %c0_11] : memref<512x128xf32, #tpu.memory_space<vmem>>, vector<512x128xf32>
      %c0_12 = arith.constant 0 : index
      %c0_13 = arith.constant 0 : index
      %13 = vector.load %arg5[%c0_12, %c0_13] : memref<1x128xf32, #tpu.memory_space<vmem>>, vector<1x128xf32>
      %14 = vector.broadcast %13 : vector<1x128xf32> to vector<512x128xf32>
      %15 = arith.addf %12, %14 : vector<512x128xf32>
      %cst_14 = arith.constant 0.000000e+00 : f32
      %16 = vector.broadcast %cst_14 : f32 to vector<512x128xf32>
      %17 = arith.maximumf %15, %16 : vector<512x128xf32>
      %18 = arith.truncf %17 : vector<512x128xf32> to vector<512x128xbf16>
      %c0_15 = arith.constant 0 : index
      %c0_16 = arith.constant 0 : index
      %19 = vector.load %arg6[%c0_15, %c0_16] : memref<512x128xbf16, #tpu.memory_space<vmem>>, vector<512x128xbf16>
      tpu.vector_store %arg6[%c0_15, %c0_16], %18 {strides = array<i32>} : memref<512x128xbf16, #tpu.memory_space<vmem>>, vector<512x128xbf16>,
    } else {
    }
    return
  }
  func.func @transform_0(%arg0: i32, %arg1: i32, %arg2: i32) -> (i32, i32) {
    %c0_i32 = arith.constant 0 : i32
    return %arg0, %arg2 : i32, i32
  }
  func.func @transform_1(%arg0: i32, %arg1: i32, %arg2: i32) -> (i32, i32) {
    %c0_i32 = arith.constant 0 : i32
    return %arg2, %arg1 : i32, i32
  }
  func.func @transform_2(%arg0: i32, %arg1: i32, %arg2: i32) -> (i32, i32) {
    %c0_i32 = arith.constant 0 : i32
    %c0_i32_0 = arith.constant 0 : i32
    return %c0_i32, %arg1 : i32, i32
  }
  func.func @transform_3(%arg0: i32, %arg1: i32, %arg2: i32) -> (i32, i32) {
    %c0_i32 = arith.constant 0 : i32
    return %arg0, %arg1 : i32, i32
  }
}

</mosaic_0001>

<bundles_post_ra>
// kernel: tpu_custom_call.1
= control target key start
LH: loop header
LB: loop body
LE: loop exit
PB: predicated region body
PF: predicated region fallthrough
CT: control target
= control target key end

     0   :  { %8 = vsyncpa [#allocation4], 0  ;;  %s2172_s0 = inlined_call_operand.hbm [shape: bf16[512,128], index: 0, kind: input, shape index: {}]   ;;  %s2173_s1 = inlined_call_operand.hbm [shape: bf16[128,128], index: 1, kind: input, shape index: {}]   ;;  %s2174_s2 = inlined_call_operand.vmem [shape: f32[1,128], index: 2, kind: input, shape index: {}]   ;;  %s2175_s3 = inlined_call_operand.hbm [shape: bf16[512,128], index: 3, kind: output, shape index: {}]  }
   0x1   :  { %9 = vsyncpa [#allocation7], 0 }
   0x2   :  { %10 = vsyncpa [#allocation5], 0  ;;  %s2060_s12 = smov [#allocation3]  }
   0x3   :  { %s16_s13 = sshll.u32 %s2060_s12, 4  ;;  %s17_s13 = int_to_ptr.vmem [resolvable:$true] %s16_s13 }
   0x4   :  { %s2002_s14 = scalar_lea.vmem %s17_s13, 4096  ;;  %p2007_p1 = scmp.lt.s32.totalorder %s17_s13, %s17_s13 }
   0x5   :  { %p2003_p0 = scmp.ne.s32.totalorder %s17_s13, %s2002_s14  ;;  %p2008_p2 = scmp.lt.s32.totalorder %s2002_s14, %s2002_s14 }
   0x7   :  { %p2009_p3 = por %p2008_p2, %p2007_p1 }
   0x9   :  { %p2010_p4 = pnand %p2009_p3, %p2003_p0 }
   0xb   :  { %2013 = shalt.err (!%p2010_p4)
}
   0xc   :  { %s2061_s15 = smov 64   ;;  %s2062_s16 = smov 4  }
   0xd   :  { %22 = dma.hbm_to_vmem [thread:$0]  %s2172_s0, 4096, %s17_s13, [#allocation4], %s2061_s15, %s2061_s15, %s2062_s16  }
   0xe   :  { %s2063_s19 = smov [#allocation6]  }
   0xf   :  { %s28_s20 = sshll.u32 %s2063_s19, 4  ;;  %s29_s20 = int_to_ptr.vmem [resolvable:$true] %s28_s20 }
  0x10   :  { %s2022_s21 = scalar_lea.vmem %s29_s20, 1024  ;;  %p2027_p6 = scmp.lt.s32.totalorder %s29_s20, %s29_s20 }
  0x11   :  { %p2023_p5 = scmp.ne.s32.totalorder %s29_s20, %s2022_s21  ;;  %p2028_p7 = scmp.lt.s32.totalorder %s2022_s21, %s2022_s21 }
  0x13   :  { %p2029_p8 = por %p2028_p7, %p2027_p6 }
  0x15   :  { %p2030_p9 = pnand %p2029_p8, %p2023_p5 }
  0x17   :  { %2033 = shalt.err (!%p2030_p9)
}
  0x18   :  { %34 = dma.hbm_to_vmem [thread:$0]  %s2173_s1, 1024, %s29_s20, [#allocation7], %s2061_s15, %s2061_s15, %s2062_s16  }
  0x19   :  { %2054 = dma.done.wait [#allocation4], 4096  }
  0x1a   :  { %2055 = vsyncadd [#allocation4], 4294963200 }
  0x1b   :  { %2056 = dma.done.wait [#allocation7], 1024  }
  0x1c   :  { %2057 = vsyncadd [#allocation7], 4294966272  ;;  %v1954_v0 = vld [vmem:[#allocation6 + $0x38] sm:$0xff]   ;;  %v1955_v1 = vld [vmem:[#allocation6 + $0x30] sm:$0xff]  }
  0x1d   :  { %1853 = vmatprep.subr.bf16.mxu0 %v1954_v0  ;;  %1933 = vmatprep.subr.bf16.mxu1 %v1954_v0  ;;  %v1956_v2 = vld [vmem:[#allocation6 + $0x28] sm:$0xff]   ;;  %v1957_v3 = vld [vmem:[#allocation6 + $0x20] sm:$0xff]   ;;  %v1958_v6 = vld [vmem:[#allocation6 + $0x18] sm:$0xff]  }
  0x1e   :  { %1854 = vmatpush3.bf16.msra.mxu0 %v1954_v0  ;;  %1941 = vmatpush3.bf16.msra.mxu1 %v1954_v0  ;;  %v1962_v4 = vld [vmem:[#allocation3] sm:$0xff]   ;;  %v1959_v7 = vld [vmem:[#allocation6 + $0x10] sm:$0xff]   ;;  %v1960_v8 = vld [vmem:[#allocation6 + $0x8] sm:$0xff]  }
  0x1f   :  { %1855 = vmatprep.subr.bf16.mxu0 %v1955_v1  ;;  %1934 = vmatprep.subr.bf16.mxu1 %v1955_v1  ;;  %v1963_v5 = vld [vmem:[#allocation3 + $0x80] sm:$0xff]   ;;  %v1964_v10 = vld [vmem:[#allocation3 + $0x8] sm:$0xff]   ;;  %v1966_v12 = vld [vmem:[#allocation3 + $0x10] sm:$0xff]  }
  0x20   :  { %1869 = vmatprep.mubr.bf16.mxu0 %v1962_v4  ;;  %1901 = vmatprep.mubr.bf16.mxu1 %v1963_v5  ;;  %v1961_v9 = vld [vmem:[#allocation6] sm:$0xff]   ;;  %v1965_v11 = vld [vmem:[#allocation3 + $0x88] sm:$0xff]   ;;  %v1967_v13 = vld [vmem:[#allocation3 + $0x90] sm:$0xff]  }
  0x21   :  { %v1968_v14 = vld [vmem:[#allocation3 + $0x18] sm:$0xff]   ;;  %v1970_v16 = vld [vmem:[#allocation3 + $0x20] sm:$0xff]   ;;  %v1972_v18 = vld [vmem:[#allocation3 + $0x28] sm:$0xff]  }
  0x22   :  { %1856 = vmatpush3.bf16.msra.mxu0 %v1955_v1  ;;  %1942 = vmatpush3.bf16.msra.mxu1 %v1955_v1  ;;  %v1969_v15 = vld [vmem:[#allocation3 + $0x98] sm:$0xff]   ;;  %v1971_v17 = vld [vmem:[#allocation3 + $0xa0] sm:$0xff]   ;;  %v1973_v19 = vld [vmem:[#allocation3 + $0xa8] sm:$0xff]  }
  0x23   :  { %1857 = vmatprep.subr.bf16.mxu0 %v1956_v2  ;;  %1935 = vmatprep.subr.bf16.mxu1 %v1956_v2  ;;  %v1974_v20 = vld [vmem:[#allocation3 + $0x30] sm:$0xff]   ;;  %v1976_v22 = vld [vmem:[#allocation3 + $0x38] sm:$0xff]   ;;  %v1978_v24 = vld [vmem:[#allocation3 + $0x40] sm:$0xff]  }
  0x24   :  { %v1975_v21 = vld [vmem:[#allocation3 + $0xb0] sm:$0xff]   ;;  %v1977_v23 = vld [vmem:[#allocation3 + $0xb8] sm:$0xff]   ;;  %v1979_v25 = vld [vmem:[#allocation3 + $0xc0] sm:$0xff]  }
  0x25   :  { %v1980_v26 = vld [vmem:[#allocation3 + $0x48] sm:$0xff]   ;;  %v1982_v28 = vld [vmem:[#allocation3 + $0x50] sm:$0xff]   ;;  %v1984_v30 = vld [vmem:[#allocation3 + $0x58] sm:$0xff]  }
  0x26   :  { %1858 = vmatpush3.bf16.msra.mxu0 %v1956_v2  ;;  %1943 = vmatpush3.bf16.msra.mxu1 %v1956_v2  ;;  %v1981_v27 = vld [vmem:[#allocation3 + $0xc8] sm:$0xff]   ;;  %v1983_v29 = vld [vmem:[#allocation3 + $0xd0] sm:$0xff]   ;;  %v1985_v31 = vld [vmem:[#allocation3 + $0xd8] sm:$0xff]  }
  0x27   :  { %1859 = vmatprep.subr.bf16.mxu0 %v1957_v3  ;;  %1936 = vmatprep.subr.bf16.mxu1 %v1957_v3  ;;  %v1986_v32 = vld [vmem:[#allocation3 + $0x60] sm:$0xff]   ;;  %v1988_v34 = vld [vmem:[#allocation3 + $0x68] sm:$0xff]   ;;  %v1990_v36 = vld [vmem:[#allocation3 + $0x70] sm:$0xff]  }
  0x28   :  { %v1987_v33 = vld [vmem:[#allocation3 + $0xe0] sm:$0xff]   ;;  %v1989_v35 = vld [vmem:[#allocation3 + $0xe8] sm:$0xff]   ;;  %v1991_v37 = vld [vmem:[#allocation3 + $0xf0] sm:$0xff]  }
  0x29   :  { %v1992_v38 = vld [vmem:[#allocation3 + $0x78] sm:$0xff]   ;;  %v2100_v40 = vld [vmem:[%s2174_s2] ss:$0 sm:$0xff]  ;;  %s2064_s2 = smov [#allocation8]  }
  0x2a   :  { %1860 = vmatpush3.bf16.msra.mxu0 %v1957_v3  ;;  %1944 = vmatpush3.bf16.msra.mxu1 %v1957_v3  ;;  %v1993_v39 = vld [vmem:[#allocation3 + $0xf8] sm:$0xff]   ;;  %s1440_s24 = sshll.u32 %s2064_s2, 4  ;;  %s1441_s24 = int_to_ptr.vmem [resolvable:$true] %s1440_s24 }
  0x2b   :  { %1861 = vmatprep.subr.bf16.mxu0 %v1958_v6  ;;  %1937 = vmatprep.subr.bf16.mxu1 %v1958_v6  ;;  %s2034_s25 = scalar_lea.vmem %s1441_s24, 4096  ;;  %p2039_p11 = scmp.lt.s32.totalorder %s1441_s24, %s1441_s24 }
  0x2c   :  { %p2035_p10 = scmp.ne.s32.totalorder %s1441_s24, %s2034_s25  ;;  %p2040_p12 = scmp.lt.s32.totalorder %s2034_s25, %s2034_s25 }
  0x2e   :  { %1862 = vmatpush3.bf16.msra.mxu0 %v1958_v6  ;;  %1945 = vmatpush3.bf16.msra.mxu1 %v1958_v6  ;;  %p2041_p13 = por %p2040_p12, %p2039_p11 }
  0x2f   :  { %1863 = vmatprep.subr.bf16.mxu0 %v1959_v7  ;;  %1938 = vmatprep.subr.bf16.mxu1 %v1959_v7 }
  0x30   :  { %p2042_p0 = pnand %p2041_p13, %p2035_p10 }
  0x32   :  { %1864 = vmatpush3.bf16.msra.mxu0 %v1959_v7  ;;  %1946 = vmatpush3.bf16.msra.mxu1 %v1959_v7 }
  0x33   :  { %1865 = vmatprep.subr.bf16.mxu0 %v1960_v8  ;;  %1939 = vmatprep.subr.bf16.mxu1 %v1960_v8 }
  0x36   :  { %1866 = vmatpush3.bf16.msra.mxu0 %v1960_v8  ;;  %1947 = vmatpush3.bf16.msra.mxu1 %v1960_v8 }
  0x37   :  { %1867 = vmatprep.subr.bf16.mxu0 %v1961_v9  ;;  %1940 = vmatprep.subr.bf16.mxu1 %v1961_v9 }
  0x3a   :  { %1868 = vmatpush3.bf16.msra.mxu0 %v1961_v9  ;;  %1948 = vmatpush3.bf16.msra.mxu1 %v1961_v9 }
  0x3d   :  { %1870 = vmatmul.mubr.bf16.vlgmr.msra.gmra.mxu0 %v1964_v10  ;;  %1902 = vmatmul.mubr.bf16.vlgmr.msra.gmra.mxu1 %v1965_v11 }
  0x3e   :  { %1873 = vmatprep.mubr.bf16.mxu0 %v1966_v12  ;;  %1905 = vmatprep.mubr.bf16.mxu1 %v1967_v13 }
  0x45   :  { %1874 = vmatmul.mubr.bf16.gmra.mxu0 %v1968_v14  ;;  %1906 = vmatmul.mubr.bf16.gmra.mxu1 %v1969_v15 }
  0x46   :  { %1877 = vmatprep.mubr.bf16.mxu0 %v1970_v16  ;;  %1909 = vmatprep.mubr.bf16.mxu1 %v1971_v17 }
  0x4d   :  { %1878 = vmatmul.mubr.bf16.gmra.mxu0 %v1972_v18  ;;  %1910 = vmatmul.mubr.bf16.gmra.mxu1 %v1973_v19 }
  0x4e   :  { %1881 = vmatprep.mubr.bf16.mxu0 %v1974_v20  ;;  %1913 = vmatprep.mubr.bf16.mxu1 %v1975_v21 }
  0x55   :  { %1882 = vmatmul.mubr.bf16.gmra.mxu0 %v1976_v22  ;;  %1914 = vmatmul.mubr.bf16.gmra.mxu1 %v1977_v23 }
  0x56   :  { %1885 = vmatprep.mubr.bf16.mxu0 %v1978_v24  ;;  %1917 = vmatprep.mubr.bf16.mxu1 %v1979_v25 }
  0x5d   :  { %1886 = vmatmul.mubr.bf16.gmra.mxu0 %v1980_v26  ;;  %1918 = vmatmul.mubr.bf16.gmra.mxu1 %v1981_v27 }
  0x5e   :  { %1889 = vmatprep.mubr.bf16.mxu0 %v1982_v28  ;;  %1921 = vmatprep.mubr.bf16.mxu1 %v1983_v29 }
  0x65   :  { %1890 = vmatmul.mubr.bf16.gmra.mxu0 %v1984_v30  ;;  %1922 = vmatmul.mubr.bf16.gmra.mxu1 %v1985_v31 }
  0x66   :  { %1893 = vmatprep.mubr.bf16.mxu0 %v1986_v32  ;;  %1925 = vmatprep.mubr.bf16.mxu1 %v1987_v33 }
  0x6d   :  { %1894 = vmatmul.mubr.bf16.gmra.mxu0 %v1988_v34  ;;  %1926 = vmatmul.mubr.bf16.gmra.mxu1 %v1989_v35 }
  0x6e   :  { %1897 = vmatprep.mubr.bf16.mxu0 %v1990_v36  ;;  %1929 = vmatprep.mubr.bf16.mxu1 %v1991_v37 }
  0x75   :  { %1898 = vmatmul.mubr.bf16.gmra.mxu0 %v1992_v38  ;;  %1930 = vmatmul.mubr.bf16.gmra.mxu1 %v1993_v39 }
  0xfd   :  { %v1871_v41 = vpop.f32.mrf.mxu0  ;;  %v1903_v42 = vpop.f32.mrf.mxu1 }
  0xfe   :  { %v989_v43 = vadd.f32 %v1871_v41, %v2100_v40  ;;  %v1021_v44 = vadd.f32 %v1903_v42, %v2100_v40 }
  0xff   :  { %v530_v45 = vpop.f32.mrf.mxu0  ;;  %v658_v46 = vpop.f32.mrf.mxu1 }
 0x100   :  { %v987_v47 = vadd.f32 %v2100_v40, %v530_v45  ;;  %v1019_v48 = vadd.f32 %v2100_v40, %v658_v46  ;;  %v1053_v53 = vmax.f32 %v989_v43, 0.0  ;;  %v1085_v54 = vmax.f32 %v1021_v44, 0.0 }
 0x101   :  { %v1872_v49 = vpop.f32.mrf.mxu0  ;;  %v1904_v50 = vpop.f32.mrf.mxu1 }
 0x102   :  { %v990_v51 = vadd.f32 %v1872_v49, %v2100_v40  ;;  %v1022_v52 = vadd.f32 %v1904_v50, %v2100_v40  ;;  %v1051_v61 = vmax.f32 %v987_v47, 0.0  ;;  %v1083_v62 = vmax.f32 %v1019_v48, 0.0 }
 0x103   :  { %v533_v55 = vpop.f32.mrf.mxu0  ;;  %v661_v56 = vpop.f32.mrf.mxu1 }
 0x104   :  { %v1054_v57 = vmax.f32 %v990_v51, 0.0  ;;  %v1086_v58 = vmax.f32 %v1022_v52, 0.0  ;;  %v988_v59 = vadd.f32 %v2100_v40, %v533_v55  ;;  %v1020_v60 = vadd.f32 %v2100_v40, %v661_v56 }
 0x105   :  { %v1875_v63 = vpop.f32.mrf.mxu0  ;;  %v1907_v0 = vpop.f32.mrf.mxu1 }
 0x106   :  { %v1630_v1 = vpack.c.bf16 %v1054_v57, %v1053_v53  ;;  %v1710_v2 = vpack.c.bf16 %v1086_v58, %v1085_v54  ;;  %v1052_v3 = vmax.f32 %v988_v59, 0.0  ;;  %v1084_v4 = vmax.f32 %v1020_v60, 0.0 }
 0x107   :  { %v993_v5 = vadd.f32 %v1875_v63, %v2100_v40  ;;  %v1025_v6 = vadd.f32 %v1907_v0, %v2100_v40  ;;  %v546_v7 = vpop.f32.mrf.mxu0  ;;  %v674_v8 = vpop.f32.mrf.mxu1 }
 0x108   :  { %1782 = vst [vmem:[#allocation8 + $0x8] sm:$0xff] %v1630_v1   ;;  %1798 = vst [vmem:[#allocation8 + $0x88] sm:$0xff] %v1710_v2   ;;  %v1625_v9 = vpack.c.bf16 %v1052_v3, %v1051_v61  ;;  %v1705_v10 = vpack.c.bf16 %v1084_v4, %v1083_v62  ;;  %v991_v11 = vadd.f32 %v2100_v40, %v546_v7 }
 0x109   :  { %v1023_v12 = vadd.f32 %v2100_v40, %v674_v8  ;;  %v1876_v13 = vpop.f32.mrf.mxu0  ;;  %v1908_v14 = vpop.f32.mrf.mxu1  ;;  %v1057_v17 = vmax.f32 %v993_v5, 0.0  ;;  %v1089_v18 = vmax.f32 %v1025_v6, 0.0 }
 0x10a   :  { %1626 = vst [vmem:[#allocation8] sm:$0xff] %v1625_v9   ;;  %1797 = vst [vmem:[#allocation8 + $0x80] sm:$0xff] %v1705_v10   ;;  %v994_v15 = vadd.f32 %v1876_v13, %v2100_v40  ;;  %v1026_v16 = vadd.f32 %v1908_v14, %v2100_v40  ;;  %v1055_v25 = vmax.f32 %v991_v11, 0.0 }
 0x10b   :  { %v549_v19 = vpop.f32.mrf.mxu0  ;;  %v677_v20 = vpop.f32.mrf.mxu1  ;;  %v1087_v26 = vmax.f32 %v1023_v12, 0.0 }
 0x10c   :  { %v1058_v21 = vmax.f32 %v994_v15, 0.0  ;;  %v1090_v22 = vmax.f32 %v1026_v16, 0.0  ;;  %v992_v23 = vadd.f32 %v2100_v40, %v549_v19  ;;  %v1024_v24 = vadd.f32 %v2100_v40, %v677_v20 }
 0x10d   :  { %v1879_v27 = vpop.f32.mrf.mxu0  ;;  %v1911_v28 = vpop.f32.mrf.mxu1 }
 0x10e   :  { %v1640_v29 = vpack.c.bf16 %v1058_v21, %v1057_v17  ;;  %v1720_v30 = vpack.c.bf16 %v1090_v22, %v1089_v18  ;;  %v1056_v31 = vmax.f32 %v992_v23, 0.0  ;;  %v1088_v32 = vmax.f32 %v1024_v24, 0.0 }
 0x10f   :  { %v997_v33 = vadd.f32 %v1879_v27, %v2100_v40  ;;  %v1029_v34 = vadd.f32 %v1911_v28, %v2100_v40  ;;  %v562_v35 = vpop.f32.mrf.mxu0  ;;  %v690_v36 = vpop.f32.mrf.mxu1 }
 0x110   :  { %1784 = vst [vmem:[#allocation8 + $0x18] sm:$0xff] %v1640_v29   ;;  %1800 = vst [vmem:[#allocation8 + $0x98] sm:$0xff] %v1720_v30   ;;  %v1635_v37 = vpack.c.bf16 %v1056_v31, %v1055_v25  ;;  %v1715_v38 = vpack.c.bf16 %v1088_v32, %v1087_v26  ;;  %v995_v39 = vadd.f32 %v2100_v40, %v562_v35 }
 0x111   :  { %v1027_v41 = vadd.f32 %v2100_v40, %v690_v36  ;;  %v1880_v42 = vpop.f32.mrf.mxu0  ;;  %v1912_v43 = vpop.f32.mrf.mxu1  ;;  %v1061_v46 = vmax.f32 %v997_v33, 0.0  ;;  %v1093_v47 = vmax.f32 %v1029_v34, 0.0 }
 0x112   :  { %1783 = vst [vmem:[#allocation8 + $0x10] sm:$0xff] %v1635_v37   ;;  %1799 = vst [vmem:[#allocation8 + $0x90] sm:$0xff] %v1715_v38   ;;  %v998_v44 = vadd.f32 %v1880_v42, %v2100_v40  ;;  %v1030_v45 = vadd.f32 %v1912_v43, %v2100_v40  ;;  %v1059_v54 = vmax.f32 %v995_v39, 0.0 }
 0x113   :  { %v565_v48 = vpop.f32.mrf.mxu0  ;;  %v693_v49 = vpop.f32.mrf.mxu1  ;;  %v1091_v55 = vmax.f32 %v1027_v41, 0.0 }
 0x114   :  { %v1062_v50 = vmax.f32 %v998_v44, 0.0  ;;  %v1094_v51 = vmax.f32 %v1030_v45, 0.0  ;;  %v996_v52 = vadd.f32 %v2100_v40, %v565_v48  ;;  %v1028_v53 = vadd.f32 %v2100_v40, %v693_v49 }
 0x115   :  { %v1883_v56 = vpop.f32.mrf.mxu0  ;;  %v1915_v57 = vpop.f32.mrf.mxu1 }
 0x116   :  { %v1650_v58 = vpack.c.bf16 %v1062_v50, %v1061_v46  ;;  %v1730_v59 = vpack.c.bf16 %v1094_v51, %v1093_v47  ;;  %v1060_v60 = vmax.f32 %v996_v52, 0.0  ;;  %v1092_v61 = vmax.f32 %v1028_v53, 0.0 }
 0x117   :  { %v1001_v62 = vadd.f32 %v1883_v56, %v2100_v40  ;;  %v1033_v63 = vadd.f32 %v1915_v57, %v2100_v40  ;;  %v578_v0 = vpop.f32.mrf.mxu0  ;;  %v706_v1 = vpop.f32.mrf.mxu1 }
 0x118   :  { %1786 = vst [vmem:[#allocation8 + $0x28] sm:$0xff] %v1650_v58   ;;  %1802 = vst [vmem:[#allocation8 + $0xa8] sm:$0xff] %v1730_v59   ;;  %v1645_v2 = vpack.c.bf16 %v1060_v60, %v1059_v54  ;;  %v1725_v3 = vpack.c.bf16 %v1092_v61, %v1091_v55  ;;  %v999_v4 = vadd.f32 %v2100_v40, %v578_v0 }
 0x119   :  { %v1031_v5 = vadd.f32 %v2100_v40, %v706_v1  ;;  %v1884_v6 = vpop.f32.mrf.mxu0  ;;  %v1916_v7 = vpop.f32.mrf.mxu1  ;;  %v1065_v10 = vmax.f32 %v1001_v62, 0.0  ;;  %v1097_v11 = vmax.f32 %v1033_v63, 0.0 }
 0x11a   :  { %1785 = vst [vmem:[#allocation8 + $0x20] sm:$0xff] %v1645_v2   ;;  %1801 = vst [vmem:[#allocation8 + $0xa0] sm:$0xff] %v1725_v3   ;;  %v1002_v8 = vadd.f32 %v1884_v6, %v2100_v40  ;;  %v1034_v9 = vadd.f32 %v1916_v7, %v2100_v40  ;;  %v1063_v18 = vmax.f32 %v999_v4, 0.0 }
 0x11b   :  { %v581_v12 = vpop.f32.mrf.mxu0  ;;  %v709_v13 = vpop.f32.mrf.mxu1  ;;  %v1095_v19 = vmax.f32 %v1031_v5, 0.0 }
 0x11c   :  { %v1066_v14 = vmax.f32 %v1002_v8, 0.0  ;;  %v1098_v15 = vmax.f32 %v1034_v9, 0.0  ;;  %v1000_v16 = vadd.f32 %v2100_v40, %v581_v12  ;;  %v1032_v17 = vadd.f32 %v2100_v40, %v709_v13 }
 0x11d   :  { %v1887_v20 = vpop.f32.mrf.mxu0  ;;  %v1919_v21 = vpop.f32.mrf.mxu1 }
 0x11e   :  { %v1660_v22 = vpack.c.bf16 %v1066_v14, %v1065_v10  ;;  %v1740_v23 = vpack.c.bf16 %v1098_v15, %v1097_v11  ;;  %v1064_v24 = vmax.f32 %v1000_v16, 0.0  ;;  %v1096_v25 = vmax.f32 %v1032_v17, 0.0 }
 0x11f   :  { %v1005_v26 = vadd.f32 %v1887_v20, %v2100_v40  ;;  %v1037_v27 = vadd.f32 %v1919_v21, %v2100_v40  ;;  %v594_v28 = vpop.f32.mrf.mxu0  ;;  %v722_v29 = vpop.f32.mrf.mxu1 }
 0x120   :  { %1788 = vst [vmem:[#allocation8 + $0x38] sm:$0xff] %v1660_v22   ;;  %1804 = vst [vmem:[#allocation8 + $0xb8] sm:$0xff] %v1740_v23   ;;  %v1655_v30 = vpack.c.bf16 %v1064_v24, %v1063_v18  ;;  %v1735_v31 = vpack.c.bf16 %v1096_v25, %v1095_v19  ;;  %v1003_v32 = vadd.f32 %v2100_v40, %v594_v28 }
 0x121   :  { %v1035_v33 = vadd.f32 %v2100_v40, %v722_v29  ;;  %v1888_v34 = vpop.f32.mrf.mxu0  ;;  %v1920_v35 = vpop.f32.mrf.mxu1  ;;  %v1069_v38 = vmax.f32 %v1005_v26, 0.0  ;;  %v1101_v39 = vmax.f32 %v1037_v27, 0.0 }
 0x122   :  { %1787 = vst [vmem:[#allocation8 + $0x30] sm:$0xff] %v1655_v30   ;;  %1803 = vst [vmem:[#allocation8 + $0xb0] sm:$0xff] %v1735_v31   ;;  %v1006_v36 = vadd.f32 %v1888_v34, %v2100_v40  ;;  %v1038_v37 = vadd.f32 %v1920_v35, %v2100_v40  ;;  %v1067_v47 = vmax.f32 %v1003_v32, 0.0 }
 0x123   :  { %v597_v41 = vpop.f32.mrf.mxu0  ;;  %v725_v42 = vpop.f32.mrf.mxu1  ;;  %v1099_v48 = vmax.f32 %v1035_v33, 0.0 }
 0x124   :  { %v1070_v43 = vmax.f32 %v1006_v36, 0.0  ;;  %v1102_v44 = vmax.f32 %v1038_v37, 0.0  ;;  %v1004_v45 = vadd.f32 %v2100_v40, %v597_v41  ;;  %v1036_v46 = vadd.f32 %v2100_v40, %v725_v42 }
 0x125   :  { %v1891_v49 = vpop.f32.mrf.mxu0  ;;  %v1923_v50 = vpop.f32.mrf.mxu1 }
 0x126   :  { %v1670_v51 = vpack.c.bf16 %v1070_v43, %v1069_v38  ;;  %v1750_v52 = vpack.c.bf16 %v1102_v44, %v1101_v39  ;;  %v1068_v53 = vmax.f32 %v1004_v45, 0.0  ;;  %v1100_v54 = vmax.f32 %v1036_v46, 0.0 }
 0x127   :  { %v1009_v55 = vadd.f32 %v1891_v49, %v2100_v40  ;;  %v1041_v56 = vadd.f32 %v1923_v50, %v2100_v40  ;;  %v610_v57 = vpop.f32.mrf.mxu0  ;;  %v738_v58 = vpop.f32.mrf.mxu1 }
 0x128   :  { %1790 = vst [vmem:[#allocation8 + $0x48] sm:$0xff] %v1670_v51   ;;  %1806 = vst [vmem:[#allocation8 + $0xc8] sm:$0xff] %v1750_v52   ;;  %v1665_v59 = vpack.c.bf16 %v1068_v53, %v1067_v47  ;;  %v1745_v60 = vpack.c.bf16 %v1100_v54, %v1099_v48  ;;  %v1007_v61 = vadd.f32 %v2100_v40, %v610_v57 }
 0x129   :  { %v1039_v62 = vadd.f32 %v2100_v40, %v738_v58  ;;  %v1892_v63 = vpop.f32.mrf.mxu0  ;;  %v1924_v0 = vpop.f32.mrf.mxu1  ;;  %v1073_v3 = vmax.f32 %v1009_v55, 0.0  ;;  %v1105_v4 = vmax.f32 %v1041_v56, 0.0 }
 0x12a   :  { %1789 = vst [vmem:[#allocation8 + $0x40] sm:$0xff] %v1665_v59   ;;  %1805 = vst [vmem:[#allocation8 + $0xc0] sm:$0xff] %v1745_v60   ;;  %v1010_v1 = vadd.f32 %v1892_v63, %v2100_v40  ;;  %v1042_v2 = vadd.f32 %v1924_v0, %v2100_v40  ;;  %v1071_v11 = vmax.f32 %v1007_v61, 0.0 }
 0x12b   :  { %v613_v5 = vpop.f32.mrf.mxu0  ;;  %v741_v6 = vpop.f32.mrf.mxu1  ;;  %v1103_v12 = vmax.f32 %v1039_v62, 0.0 }
 0x12c   :  { %v1074_v7 = vmax.f32 %v1010_v1, 0.0  ;;  %v1106_v8 = vmax.f32 %v1042_v2, 0.0  ;;  %v1008_v9 = vadd.f32 %v2100_v40, %v613_v5  ;;  %v1040_v10 = vadd.f32 %v2100_v40, %v741_v6 }
 0x12d   :  { %v1895_v13 = vpop.f32.mrf.mxu0  ;;  %v1927_v14 = vpop.f32.mrf.mxu1 }
 0x12e   :  { %v1680_v15 = vpack.c.bf16 %v1074_v7, %v1073_v3  ;;  %v1760_v16 = vpack.c.bf16 %v1106_v8, %v1105_v4  ;;  %v1072_v17 = vmax.f32 %v1008_v9, 0.0  ;;  %v1104_v18 = vmax.f32 %v1040_v10, 0.0 }
 0x12f   :  { %v1013_v19 = vadd.f32 %v1895_v13, %v2100_v40  ;;  %v1045_v20 = vadd.f32 %v1927_v14, %v2100_v40  ;;  %v626_v21 = vpop.f32.mrf.mxu0  ;;  %v754_v22 = vpop.f32.mrf.mxu1 }
 0x130   :  { %1792 = vst [vmem:[#allocation8 + $0x58] sm:$0xff] %v1680_v15   ;;  %1808 = vst [vmem:[#allocation8 + $0xd8] sm:$0xff] %v1760_v16   ;;  %v1675_v23 = vpack.c.bf16 %v1072_v17, %v1071_v11  ;;  %v1755_v24 = vpack.c.bf16 %v1104_v18, %v1103_v12  ;;  %v1011_v25 = vadd.f32 %v2100_v40, %v626_v21 }
 0x131   :  { %v1043_v26 = vadd.f32 %v2100_v40, %v754_v22  ;;  %v1896_v27 = vpop.f32.mrf.mxu0  ;;  %v1928_v28 = vpop.f32.mrf.mxu1  ;;  %v1077_v31 = vmax.f32 %v1013_v19, 0.0  ;;  %v1109_v32 = vmax.f32 %v1045_v20, 0.0 }
 0x132   :  { %1791 = vst [vmem:[#allocation8 + $0x50] sm:$0xff] %v1675_v23   ;;  %1807 = vst [vmem:[#allocation8 + $0xd0] sm:$0xff] %v1755_v24   ;;  %v1014_v29 = vadd.f32 %v1896_v27, %v2100_v40  ;;  %v1046_v30 = vadd.f32 %v1928_v28, %v2100_v40  ;;  %v1075_v39 = vmax.f32 %v1011_v25, 0.0 }
 0x133   :  { %v629_v33 = vpop.f32.mrf.mxu0  ;;  %v757_v34 = vpop.f32.mrf.mxu1  ;;  %v1107_v41 = vmax.f32 %v1043_v26, 0.0 }
 0x134   :  { %v1078_v35 = vmax.f32 %v1014_v29, 0.0  ;;  %v1110_v36 = vmax.f32 %v1046_v30, 0.0  ;;  %v1012_v37 = vadd.f32 %v2100_v40, %v629_v33  ;;  %v1044_v38 = vadd.f32 %v2100_v40, %v757_v34 }
 0x135   :  { %v1899_v42 = vpop.f32.mrf.mxu0  ;;  %v1931_v43 = vpop.f32.mrf.mxu1 }
 0x136   :  { %v1690_v44 = vpack.c.bf16 %v1078_v35, %v1077_v31  ;;  %v1770_v45 = vpack.c.bf16 %v1110_v36, %v1109_v32  ;;  %v1076_v46 = vmax.f32 %v1012_v37, 0.0  ;;  %v1108_v47 = vmax.f32 %v1044_v38, 0.0 }
 0x137   :  { %v1017_v48 = vadd.f32 %v1899_v42, %v2100_v40  ;;  %v1049_v49 = vadd.f32 %v1931_v43, %v2100_v40  ;;  %v642_v50 = vpop.f32.mrf.mxu0  ;;  %v770_v51 = vpop.f32.mrf.mxu1 }
 0x138   :  { %1794 = vst [vmem:[#allocation8 + $0x68] sm:$0xff] %v1690_v44   ;;  %1810 = vst [vmem:[#allocation8 + $0xe8] sm:$0xff] %v1770_v45   ;;  %v1685_v52 = vpack.c.bf16 %v1076_v46, %v1075_v39  ;;  %v1765_v53 = vpack.c.bf16 %v1108_v47, %v1107_v41  ;;  %v1015_v54 = vadd.f32 %v2100_v40, %v642_v50 }
 0x139   :  { %v1047_v55 = vadd.f32 %v2100_v40, %v770_v51  ;;  %v1900_v56 = vpop.f32.mrf.mxu0  ;;  %v1932_v57 = vpop.f32.mrf.mxu1  ;;  %v1081_v60 = vmax.f32 %v1017_v48, 0.0  ;;  %v1113_v61 = vmax.f32 %v1049_v49, 0.0 }
 0x13a   :  { %1793 = vst [vmem:[#allocation8 + $0x60] sm:$0xff] %v1685_v52   ;;  %1809 = vst [vmem:[#allocation8 + $0xe0] sm:$0xff] %v1765_v53   ;;  %v1018_v58 = vadd.f32 %v1900_v56, %v2100_v40  ;;  %v1050_v59 = vadd.f32 %v1932_v57, %v2100_v40  ;;  %v1079_v4 = vmax.f32 %v1015_v54, 0.0 }
 0x13b   :  { %v645_v62 = vpop.f32.mrf.mxu0  ;;  %v773_v63 = vpop.f32.mrf.mxu1  ;;  %v1111_v5 = vmax.f32 %v1047_v55, 0.0 }
 0x13c   :  { %v1082_v0 = vmax.f32 %v1018_v58, 0.0  ;;  %v1114_v1 = vmax.f32 %v1050_v59, 0.0  ;;  %v1016_v2 = vadd.f32 %v2100_v40, %v645_v62  ;;  %v1048_v3 = vadd.f32 %v2100_v40, %v773_v63 }
 0x13e   :  { %v1700_v6 = vpack.c.bf16 %v1082_v0, %v1081_v60  ;;  %v1780_v7 = vpack.c.bf16 %v1114_v1, %v1113_v61  ;;  %v1080_v8 = vmax.f32 %v1016_v2, 0.0  ;;  %v1112_v9 = vmax.f32 %v1048_v3, 0.0 }
 0x140   :  { %1796 = vst [vmem:[#allocation8 + $0x78] sm:$0xff] %v1700_v6   ;;  %1812 = vst [vmem:[#allocation8 + $0xf8] sm:$0xff] %v1780_v7   ;;  %v1695_v10 = vpack.c.bf16 %v1080_v8, %v1079_v4  ;;  %v1775_v11 = vpack.c.bf16 %v1112_v9, %v1111_v5 }
 0x142   :  { %1795 = vst [vmem:[#allocation8 + $0x70] sm:$0xff] %v1695_v10   ;;  %1811 = vst [vmem:[#allocation8 + $0xf0] sm:$0xff] %v1775_v11  }
 0x143   :  { %2045 = shalt.err (!%p2042_p0)
}
 0x144   :  { %1446 = dma.vmem_to_hbm [thread:$0]  %s1441_s24, 4096, %s2175_s3, [#allocation5], %s2061_s15, %s2061_s15, %s2062_s16  }
 0x145   :  { %2058 = dma.done.wait [#allocation5], 4096  }
 0x146   :  { %2059 = vsyncadd [#allocation5], 4294963200 }
 0x147   :  { %1450 = vsyncpa [#allocation4], 1 }
 0x148   :  { %1451 = vsyncpa [#allocation7], 1 }
 0x149   :  { %1452 = vsyncpa [#allocation5], 1 }

</bundles_post_ra>
